<compile_context>
chip_gen: v5e
topology: v5e:2x2
jax: 0.10.0
libtpu: 0.0.40
codegen_flags: <defaults>
</compile_context>

<pallas_src>
import functools

import jax
import jax.numpy as jnp
from jax.experimental import pallas as pl
from jax.experimental.pallas import tpu as pltpu


# ----------------------------------------------------------------------------- kernel
def _make_fused_encoder_kernel(num_layers):
    """Kernel body for a fixed (static) number of layers.

    Ref order: obs, prev_state, prev_action,
               W0_obs, W0_state, W0_action, b0, W1, b1, ..., W_{L-1}, b_{L-1},
               out.
    All weights are already (K, N); biases are (1, N).
    """

    def kernel(*refs):
        obs_ref, st_ref, act_ref = refs[0], refs[1], refs[2]
        o_ref = refs[-1]
        wb = refs[3:-1]

        # Layer 0: cat(obs, st, act) @ W0 == obs@W0_obs + st@W0_st + act@W0_act
        w_obs, w_st, w_act, b0 = wb[0], wb[1], wb[2], wb[3]
        y = jnp.dot(obs_ref[...], w_obs[...], preferred_element_type=jnp.float32)
        y = y + jnp.dot(st_ref[...], w_st[...], preferred_element_type=jnp.float32)
        y = y + jnp.dot(act_ref[...], w_act[...], preferred_element_type=jnp.float32)
        y = y + b0[...]
        x = jnp.maximum(y, 0.01 * y)            # leaky_relu(0.01) -> single vmax

        k = 4
        for _ in range(num_layers - 1):
            w, b = wb[k], wb[k + 1]
            k += 2
            y = jnp.dot(x, w[...], preferred_element_type=jnp.float32) + b[...]
            x = jnp.maximum(y, 0.01 * y)

        o_ref[...] = x.astype(o_ref.dtype)

    return kernel


# ----------------------------------------------------------------------------- params
def init_encoder_params(key, input_dim, hidden_dim, state_dim, num_layers):
    """Synthetic init matching nn.Linear shapes of Encoder (PyTorch (N, K) layout)."""
    dims = []
    if num_layers > 1:
        dims.append((input_dim, hidden_dim))
        for _ in range(num_layers - 2):
            dims.append((hidden_dim, hidden_dim))
        dims.append((hidden_dim, state_dim))
    else:
        dims.append((input_dim, state_dim))
    params = []
    for i, (fan_in, fan_out) in enumerate(dims):
        kw, kb = jax.random.split(jax.random.fold_in(key, i))
        bound = 1.0 / jnp.sqrt(jnp.float32(fan_in))
        w = jax.random.uniform(kw, (fan_out, fan_in), jnp.float32, -bound, bound)
        b = jax.random.uniform(kb, (fan_out,), jnp.float32, -bound, bound)
        params.append((w, b))
    return params


def pack_encoder_params(params, obs_dim, state_dim, action_dim):
    """One-time prep (outside the hot path): transpose (N,K)->(K,N), split W0 by
    input chunk so the concat folds into three dots, reshape biases to (1,N)."""
    flat = []
    w0, b0 = params[0]
    w0_t = jnp.transpose(w0)                                   # (K, N)
    flat.append(w0_t[:obs_dim])                                # (obs_dim,   N)
    flat.append(w0_t[obs_dim:obs_dim + state_dim])             # (state_dim, N)
    flat.append(w0_t[obs_dim + state_dim:
                     obs_dim + state_dim + action_dim])        # (action_dim, N)
    flat.append(b0.reshape(1, -1))
    for (w, b) in params[1:]:
        flat.append(jnp.transpose(w))                          # (K, N)
        flat.append(b.reshape(1, -1))
    return [jnp.asarray(a) for a in flat]


# ----------------------------------------------------------------------------- forward
def _pick_batch_tile(batch):
    # Small batches: one whole-batch tile (block == full dim satisfies the (8,128)
    # rule).  Large batches: a few-hundred-row 8-aligned tile; ragged last tiles
    # are handled via pl.cdiv in the grid.
    if batch <= 512:
        return batch
    for tb in (512, 256, 128):
        if batch % tb == 0:
            return tb
    return 256


@functools.partial(jax.jit, static_argnames=("num_layers",))
def encoder_forward(flat_params, observation, prev_state, prev_action, *, num_layers):
    B, obs_dim = observation.shape
    state_dim = prev_state.shape[1]
    action_dim = prev_action.shape[1]
    out_dim = flat_params[-1].shape[1]

    tb = _pick_batch_tile(B)
    grid = (pl.cdiv(B, tb),)

    def batch_spec(d):
        return pl.BlockSpec((tb, d), lambda i: (i, 0))

    def resident_spec(a):
        # Whole array, same block for every grid step -> stays resident in VMEM.
        return pl.BlockSpec(a.shape, lambda i: (0, 0))

    in_specs = [batch_spec(obs_dim), batch_spec(state_dim), batch_spec(action_dim)]
    in_specs += [resident_spec(a) for a in flat_params]

    # Advisory cost hint for the XLA scheduler.
    dims_k = [obs_dim + state_dim + action_dim]
    dims_n = [flat_params[3].shape[1]]
    for w in flat_params[4::2]:
        dims_k.append(w.shape[0])
        dims_n.append(w.shape[1])
    flops = sum(2 * B * k * n for k, n in zip(dims_k, dims_n))
    bytes_accessed = 4 * (
        B * (obs_dim + state_dim + action_dim + out_dim)
        + sum(int(a.size) for a in flat_params)
    )

    kernel = _make_fused_encoder_kernel(num_layers)
    return pl.pallas_call(
        kernel,
        out_shape=jax.ShapeDtypeStruct((B, out_dim), jnp.float32),
        grid=grid,
        in_specs=in_specs,
        out_specs=pl.BlockSpec((tb, out_dim), lambda i: (i, 0)),
        compiler_params=pltpu.CompilerParams(
            dimension_semantics=("parallel",),   # batch tiles shard across v7x's 2 TCs
        ),
        cost_estimate=pl.CostEstimate(
            flops=flops, transcendentals=0, bytes_accessed=bytes_accessed
        ),
    )(observation, prev_state, prev_action, *flat_params)


# ----------------------------------------------------------------------------- reference
def encoder_reference(params, observation, prev_state, prev_action):
    x = jnp.concatenate([observation, prev_state, prev_action], axis=1)
    for (w, b) in params:
        y = x @ w.T + b
        x = jnp.where(y > 0, y, 0.01 * y)
    return x


if __name__ == "__main__":
    key = jax.random.PRNGKey(0)

    batch = 2
    obs_dim, state_dim, action_dim = 16, 8, 4
    input_dim = obs_dim + state_dim + action_dim   # 28 — matches cat width
    hidden_dim = 32
    num_layers = 3

    k_obs, k_st, k_act, k_par = jax.random.split(key, 4)
    observation = jax.random.normal(k_obs, (batch, obs_dim), jnp.float32)
    prev_state = jax.random.normal(k_st, (batch, state_dim), jnp.float32)
    prev_action = jax.random.normal(k_act, (batch, action_dim), jnp.float32)

    params = init_encoder_params(k_par, input_dim, hidden_dim, state_dim, num_layers)
    flat_params = pack_encoder_params(params, obs_dim, state_dim, action_dim)

    out = encoder_forward(flat_params, observation, prev_state, prev_action,
                          num_layers=num_layers)
    out = jax.block_until_ready(out)

    ref = encoder_reference(params, observation, prev_state, prev_action)
    assert out.shape == (batch, state_dim), out.shape
    assert jnp.allclose(out, ref, atol=1e-4, rtol=1e-4), "mismatch vs reference"

    print("KERNEL_OK")
</pallas_src>

<mosaic_0001>
module attributes {stable_mosaic.version = 11 : i64} {
  func.func @kernel(%arg0: i32, %arg1: memref<2x16xf32, #tpu.memory_space<vmem>>, %arg2: memref<2x8xf32, #tpu.memory_space<vmem>>, %arg3: memref<2x4xf32, #tpu.memory_space<vmem>>, %arg4: memref<16x32xf32, #tpu.memory_space<vmem>>, %arg5: memref<8x32xf32, #tpu.memory_space<vmem>>, %arg6: memref<4x32xf32, #tpu.memory_space<vmem>>, %arg7: memref<1x32xf32, #tpu.memory_space<vmem>>, %arg8: memref<32x32xf32, #tpu.memory_space<vmem>>, %arg9: memref<1x32xf32, #tpu.memory_space<vmem>>, %arg10: memref<32x8xf32, #tpu.memory_space<vmem>>, %arg11: memref<1x8xf32, #tpu.memory_space<vmem>>, %arg12: memref<2x8xf32, #tpu.memory_space<vmem>>) attributes {dimension_semantics = [#tpu.dimension_semantics<parallel>], iteration_bounds = array<i64: 1>, scalar_prefetch = 0 : i64, scratch_operands = 0 : i64, tpu.core_type = #tpu.core_type<tc>, window_params = [{transform_indices = @transform_0, window_bounds = array<i64: 2, 16>}, {transform_indices = @transform_1, window_bounds = array<i64: 2, 8>}, {transform_indices = @transform_2, window_bounds = array<i64: 2, 4>}, {pipeline_mode = #tpu.pipeline_mode<synchronous>, transform_indices = @transform_3, window_bounds = array<i64: 16, 32>}, {pipeline_mode = #tpu.pipeline_mode<synchronous>, transform_indices = @transform_4, window_bounds = array<i64: 8, 32>}, {pipeline_mode = #tpu.pipeline_mode<synchronous>, transform_indices = @transform_5, window_bounds = array<i64: 4, 32>}, {pipeline_mode = #tpu.pipeline_mode<synchronous>, transform_indices = @transform_6, window_bounds = array<i64: 1, 32>}, {pipeline_mode = #tpu.pipeline_mode<synchronous>, transform_indices = @transform_7, window_bounds = array<i64: 32, 32>}, {pipeline_mode = #tpu.pipeline_mode<synchronous>, transform_indices = @transform_8, window_bounds = array<i64: 1, 32>}, {pipeline_mode = #tpu.pipeline_mode<synchronous>, transform_indices = @transform_9, window_bounds = array<i64: 32, 8>}, {pipeline_mode = #tpu.pipeline_mode<synchronous>, transform_indices = @transform_10, window_bounds = array<i64: 1, 8>}, {transform_indices = @transform_11, window_bounds = array<i64: 2, 8>}]} {
    %c0 = arith.constant 0 : index
    %c0_0 = arith.constant 0 : index
    %0 = vector.load %arg1[%c0, %c0_0] : memref<2x16xf32, #tpu.memory_space<vmem>>, vector<2x16xf32>
    %c0_1 = arith.constant 0 : index
    %c0_2 = arith.constant 0 : index
    %1 = vector.load %arg4[%c0_1, %c0_2] : memref<16x32xf32, #tpu.memory_space<vmem>>, vector<16x32xf32>
    %cst = arith.constant dense<0.000000e+00> : vector<2x32xf32>
    %2 = tpu.matmul %0, %1, %cst {dimension_numbers = #tpu.dot_dimension_numbers<[1], [0], [0], [1], [0, 0, 1, 1], [], []>} : vector<2x16xf32>, vector<16x32xf32>, vector<2x32xf32> -> vector<2x32xf32>
    %c0_3 = arith.constant 0 : index
    %c0_4 = arith.constant 0 : index
    %3 = vector.load %arg2[%c0_3, %c0_4] : memref<2x8xf32, #tpu.memory_space<vmem>>, vector<2x8xf32>
    %c0_5 = arith.constant 0 : index
    %c0_6 = arith.constant 0 : index
    %4 = vector.load %arg5[%c0_5, %c0_6] : memref<8x32xf32, #tpu.memory_space<vmem>>, vector<8x32xf32>
    %cst_7 = arith.constant dense<0.000000e+00> : vector<2x32xf32>
    %5 = tpu.matmul %3, %4, %cst_7 {dimension_numbers = #tpu.dot_dimension_numbers<[1], [0], [0], [1], [0, 0, 1, 1], [], []>} : vector<2x8xf32>, vector<8x32xf32>, vector<2x32xf32> -> vector<2x32xf32>
    %6 = arith.addf %2, %5 : vector<2x32xf32>
    %c0_8 = arith.constant 0 : index
    %c0_9 = arith.constant 0 : index
    %7 = vector.load %arg3[%c0_8, %c0_9] : memref<2x4xf32, #tpu.memory_space<vmem>>, vector<2x4xf32>
    %c0_10 = arith.constant 0 : index
    %c0_11 = arith.constant 0 : index
    %8 = vector.load %arg6[%c0_10, %c0_11] : memref<4x32xf32, #tpu.memory_space<vmem>>, vector<4x32xf32>
    %cst_12 = arith.constant dense<0.000000e+00> : vector<2x32xf32>
    %9 = tpu.matmul %7, %8, %cst_12 {dimension_numbers = #tpu.dot_dimension_numbers<[1], [0], [0], [1], [0, 0, 1, 1], [], []>} : vector<2x4xf32>, vector<4x32xf32>, vector<2x32xf32> -> vector<2x32xf32>
    %10 = arith.addf %6, %9 : vector<2x32xf32>
    %c0_13 = arith.constant 0 : index
    %c0_14 = arith.constant 0 : index
    %11 = vector.load %arg7[%c0_13, %c0_14] : memref<1x32xf32, #tpu.memory_space<vmem>>, vector<1x32xf32>
    %12 = vector.broadcast %11 : vector<1x32xf32> to vector<2x32xf32>
    %13 = arith.addf %10, %12 : vector<2x32xf32>
    %cst_15 = arith.constant 0.00999999977 : f32
    %14 = vector.broadcast %cst_15 : f32 to vector<2x32xf32>
    %15 = arith.mulf %14, %13 : vector<2x32xf32>
    %16 = arith.maximumf %13, %15 : vector<2x32xf32>
    %c0_16 = arith.constant 0 : index
    %c0_17 = arith.constant 0 : index
    %17 = vector.load %arg8[%c0_16, %c0_17] : memref<32x32xf32, #tpu.memory_space<vmem>>, vector<32x32xf32>
    %cst_18 = arith.constant dense<0.000000e+00> : vector<2x32xf32>
    %18 = tpu.matmul %16, %17, %cst_18 {dimension_numbers = #tpu.dot_dimension_numbers<[1], [0], [0], [1], [0, 0, 1, 1], [], []>} : vector<2x32xf32>, vector<32x32xf32>, vector<2x32xf32> -> vector<2x32xf32>
    %c0_19 = arith.constant 0 : index
    %c0_20 = arith.constant 0 : index
    %19 = vector.load %arg9[%c0_19, %c0_20] : memref<1x32xf32, #tpu.memory_space<vmem>>, vector<1x32xf32>
    %20 = vector.broadcast %19 : vector<1x32xf32> to vector<2x32xf32>
    %21 = arith.addf %18, %20 : vector<2x32xf32>
    %cst_21 = arith.constant 0.00999999977 : f32
    %22 = vector.broadcast %cst_21 : f32 to vector<2x32xf32>
    %23 = arith.mulf %22, %21 : vector<2x32xf32>
    %24 = arith.maximumf %21, %23 : vector<2x32xf32>
    %c0_22 = arith.constant 0 : index
    %c0_23 = arith.constant 0 : index
    %25 = vector.load %arg10[%c0_22, %c0_23] : memref<32x8xf32, #tpu.memory_space<vmem>>, vector<32x8xf32>
    %cst_24 = arith.constant dense<0.000000e+00> : vector<2x8xf32>
    %26 = tpu.matmul %24, %25, %cst_24 {dimension_numbers = #tpu.dot_dimension_numbers<[1], [0], [0], [1], [0, 0, 1, 1], [], []>} : vector<2x32xf32>, vector<32x8xf32>, vector<2x8xf32> -> vector<2x8xf32>
    %c0_25 = arith.constant 0 : index
    %c0_26 = arith.constant 0 : index
    %27 = vector.load %arg11[%c0_25, %c0_26] : memref<1x8xf32, #tpu.memory_space<vmem>>, vector<1x8xf32>
    %28 = vector.broadcast %27 : vector<1x8xf32> to vector<2x8xf32>
    %29 = arith.addf %26, %28 : vector<2x8xf32>
    %cst_27 = arith.constant 0.00999999977 : f32
    %30 = vector.broadcast %cst_27 : f32 to vector<2x8xf32>
    %31 = arith.mulf %30, %29 : vector<2x8xf32>
    %32 = arith.maximumf %29, %31 : vector<2x8xf32>
    %c0_28 = arith.constant 0 : index
    %c0_29 = arith.constant 0 : index
    %33 = vector.load %arg12[%c0_28, %c0_29] : memref<2x8xf32, #tpu.memory_space<vmem>>, vector<2x8xf32>
    tpu.vector_store %arg12[%c0_28, %c0_29], %32 {strides = array<i32>} : memref<2x8xf32, #tpu.memory_space<vmem>>, vector<2x8xf32>,
    return
  }
  func.func @transform_0(%arg0: i32) -> (i32, i32) {
    %c0_i32 = arith.constant 0 : i32
    %c0_i32_0 = arith.constant 0 : i32
    return %arg0, %c0_i32 : i32, i32
  }
  func.func @transform_1(%arg0: i32) -> (i32, i32) {
    %c0_i32 = arith.constant 0 : i32
    %c0_i32_0 = arith.constant 0 : i32
    return %arg0, %c0_i32 : i32, i32
  }
  func.func @transform_2(%arg0: i32) -> (i32, i32) {
    %c0_i32 = arith.constant 0 : i32
    %c0_i32_0 = arith.constant 0 : i32
    return %arg0, %c0_i32 : i32, i32
  }
  func.func @transform_3(%arg0: i32) -> (i32, i32) {
    %c0_i32 = arith.constant 0 : i32
    %c0_i32_0 = arith.constant 0 : i32
    %c0_i32_1 = arith.constant 0 : i32
    return %c0_i32, %c0_i32_0 : i32, i32
  }
  func.func @transform_4(%arg0: i32) -> (i32, i32) {
    %c0_i32 = arith.constant 0 : i32
    %c0_i32_0 = arith.constant 0 : i32
    %c0_i32_1 = arith.constant 0 : i32
    return %c0_i32, %c0_i32_0 : i32, i32
  }
  func.func @transform_5(%arg0: i32) -> (i32, i32) {
    %c0_i32 = arith.constant 0 : i32
    %c0_i32_0 = arith.constant 0 : i32
    %c0_i32_1 = arith.constant 0 : i32
    return %c0_i32, %c0_i32_0 : i32, i32
  }
  func.func @transform_6(%arg0: i32) -> (i32, i32) {
    %c0_i32 = arith.constant 0 : i32
    %c0_i32_0 = arith.constant 0 : i32
    %c0_i32_1 = arith.constant 0 : i32
    return %c0_i32, %c0_i32_0 : i32, i32
  }
  func.func @transform_7(%arg0: i32) -> (i32, i32) {
    %c0_i32 = arith.constant 0 : i32
    %c0_i32_0 = arith.constant 0 : i32
    %c0_i32_1 = arith.constant 0 : i32
    return %c0_i32, %c0_i32_0 : i32, i32
  }
  func.func @transform_8(%arg0: i32) -> (i32, i32) {
    %c0_i32 = arith.constant 0 : i32
    %c0_i32_0 = arith.constant 0 : i32
    %c0_i32_1 = arith.constant 0 : i32
    return %c0_i32, %c0_i32_0 : i32, i32
  }
  func.func @transform_9(%arg0: i32) -> (i32, i32) {
    %c0_i32 = arith.constant 0 : i32
    %c0_i32_0 = arith.constant 0 : i32
    %c0_i32_1 = arith.constant 0 : i32
    return %c0_i32, %c0_i32_0 : i32, i32
  }
  func.func @transform_10(%arg0: i32) -> (i32, i32) {
    %c0_i32 = arith.constant 0 : i32
    %c0_i32_0 = arith.constant 0 : i32
    %c0_i32_1 = arith.constant 0 : i32
    return %c0_i32, %c0_i32_0 : i32, i32
  }
  func.func @transform_11(%arg0: i32) -> (i32, i32) {
    %c0_i32 = arith.constant 0 : i32
    %c0_i32_0 = arith.constant 0 : i32
    return %arg0, %c0_i32 : i32, i32
  }
}

</mosaic_0001>

<bundles_post_ra>
// kernel: encoder_forward.1
= control target key start
LH: loop header
LB: loop body
LE: loop exit
PB: predicated region body
PF: predicated region fallthrough
CT: control target
= control target key end

     0   :  { %16 = vsyncpa [#allocation3], 0  ;;  %s579_s0 = inlined_call_operand.vmem [shape: f32[2,16], index: 0, kind: input, shape index: {}]   ;;  %s580_s1 = inlined_call_operand.vmem [shape: f32[2,8], index: 1, kind: input, shape index: {}]   ;;  %s581_s2 = inlined_call_operand.vmem [shape: f32[2,4], index: 2, kind: input, shape index: {}]   ;;  %s582_s3 = inlined_call_operand.hbm [shape: f32[16,32], index: 3, kind: input, shape index: {}]   ;;  %s583_s4 = inlined_call_operand.vmem [shape: f32[8,32], index: 4, kind: input, shape index: {}]   ;;  %s584_s5 = inlined_call_operand.hbm [shape: f32[4,32], index: 5, kind: input, shape index: {}]   ;;  %s585_s6 = inlined_call_operand.hbm [shape: f32[1,32], index: 6, kind: input, shape index: {}]   ;;  %s586_s7 = inlined_call_operand.vmem [shape: f32[32,32], index: 7, kind: input, shape index: {}]   ;;  %s587_s8 = inlined_call_operand.hbm [shape: f32[1,32], index: 8, kind: input, shape index: {}]   ;;  %s588_s9 = inlined_call_operand.vmem [shape: f32[32,8], index: 9, kind: input, shape index: {}]   ;;  %s589_s10 = inlined_call_operand.hbm [shape: f32[1,8], index: 10, kind: input, shape index: {}]   ;;  %s590_s11 = inlined_call_operand.hbm [shape: f32[2,8], index: 11, kind: output, shape index: {}]  }
   0x1   :  { %17 = vsyncpa [#allocation6], 0 }
   0x2   :  { %18 = vsyncpa [#allocation9], 0  ;;  %s46_s19 = sshll.u32 %s584_s5, 4  ;;  %s47_s19 = int_to_ptr.hbm [resolvable:$true] %s46_s19 }
   0x3   :  { %19 = vsyncpa [#allocation4], 0  ;;  %s457_s20 = smov [#allocation5]   ;;  %s70_s24 = sshll.u32 %s587_s8, 4  ;;  %s71_s24 = int_to_ptr.hbm [resolvable:$true] %s70_s24 }
   0x4   :  { %s48_s21 = sshll.u32 %s457_s20, 4  ;;  %s458_s25 = smov [#allocation8]   ;;  %s49_s21 = int_to_ptr.vmem [resolvable:$true] %s48_s21 }
   0x5   :  { %51 = dma.hbm_to_vmem [thread:$0]  %s47_s19, 64, %s49_s21, [#allocation6]  }
   0x6   :  { %s72_s26 = sshll.u32 %s458_s25, 4  ;;  %s30_s29 = sshll.u32 %s582_s3, 4  ;;  %s73_s26 = int_to_ptr.vmem [resolvable:$true] %s72_s26  ;;  %s31_s29 = int_to_ptr.hbm [resolvable:$true] %s30_s29 }
   0x7   :  { %75 = dma.hbm_to_vmem [thread:$0]  %s71_s24, 16, %s73_s26, [#allocation9]  }
   0x8   :  { %s459_s5 = smov [#allocation2]   ;;  %s57_s14 = sshll.u32 %s585_s6, 4  ;;  %s58_s14 = int_to_ptr.hbm [resolvable:$true] %s57_s14 }
   0x9   :  { %s32_s30 = sshll.u32 %s459_s5, 4  ;;  %s460_s15 = smov 128   ;;  %s33_s30 = int_to_ptr.vmem [resolvable:$true] %s32_s30 }
   0xa   :  { %s461_s8 = smov 8   ;;  %s462_s16 = smov [#allocation7]  }
   0xb   :  { %38 = dma.hbm_to_vmem [thread:$0]  %s31_s29, 256, %s33_s30, [#allocation3], %s460_s15, %s460_s15, %s461_s8  }
   0xc   :  { %s59_s17 = sshll.u32 %s462_s16, 4  ;;  %s83_s3 = sshll.u32 %s589_s10, 4  ;;  %s60_s17 = int_to_ptr.vmem [resolvable:$true] %s59_s17  ;;  %s84_s3 = int_to_ptr.hbm [resolvable:$true] %s83_s3 }
   0xd   :  { %62 = dma.hbm_to_vmem [thread:$0]  %s58_s14, 16, %s60_s17, [#allocation6]  }
   0xe   :  { %s463_s20 = smov [#allocation10]  }
   0xf   :  { %s85_s21 = sshll.u32 %s463_s20, 4  ;;  %s86_s21 = int_to_ptr.vmem [resolvable:$true] %s85_s21 }
  0x10   :  { %88 = dma.hbm_to_vmem [thread:$0]  %s84_s3, 16, %s86_s21, [#allocation9]  }
  0x11   :  { %449 = dma.done.wait [#allocation3], 256  }
  0x12   :  { %450 = vsyncadd [#allocation3], 4294967040 }
  0x13   :  { %451 = dma.done.wait [#allocation6], 80  }
  0x14   :  { %452 = vsyncadd [#allocation6], 4294967216 }
  0x15   :  { %453 = dma.done.wait [#allocation9], 32  }
  0x16   :  { %454 = vsyncadd [#allocation9], 4294967264  ;;  %vm168_vm0 = vcmask 1043456   ;;  %vm164_vm1 = vcmask 31744   ;;  %v163_v0 = vld [vmem:[#allocation5] sm:$0xf] }
  0x17   :  { %v162_v1 = vld [vmem:[%s581_s2] sm:$0x3]  ;;  %v111_v2 = vld [vmem:[#allocation2 + $0x8] sm:$0xff]  ;;  %vm114_vm2 = vcmask 64512   ;;  %290 = vmatpush.msk.msra.mxu2 %vm168_vm0, %v163_v0  ;;  %vm138_vm3 = vcmask 130048   ;;  %v203_v7 = vld [vmem:[%s586_s7 + $0x18] sm:$0xff] }
  0x18   :  { %156 = vmatpush.msra.mxu1 %v111_v2  ;;  %v113_v3 = vld [vmem:[%s583_s4] sm:$0xff]  ;;  %291 = vmatmul.msk.f32.vlgmr.msra.gmra.mxu2 %vm164_vm1, %v162_v1  ;;  %v202_v8 = vld [vmem:[%s586_s7 + $0x10] sm:$0xff]  ;;  %v201_v9 = vld [vmem:[%s586_s7 + $0x8] sm:$0xff]  ;;  %vm208_vm4 = vcmask 261120   ;;  %s464_s18 = smov [#allocation11]   ;;  %s276_s21 = sshll.u32 %s590_s11, 4  ;;  %s277_s21 = int_to_ptr.hbm [resolvable:$true] %s276_s21 }
  0x19   :  { %v110_v4 = vld [vmem:[#allocation2] sm:$0xff]  ;;  %133 = vmatpush.msra.mxu0 %v113_v3  ;;  %224 = vmatpush.msra.mxu3 %v203_v7  ;;  %v237_v11 = vld [vmem:[%s588_s9 + $0x18] sm:$0xff]  ;;  %v302_v15 = vld [vmem:[#allocation7] ss:$0 sm:$0xff]  ;;  %s274_s19 = sshll.u32 %s464_s18, 4  ;;  %vm267_vm5 = vcmask 58368   ;;  %s275_s19 = int_to_ptr.vmem [resolvable:$true] %s274_s19 }
  0x1a   :  { %v112_v5 = vld [vmem:[%s580_s1] sm:$0x3]  ;;  %157 = vmatpush.msra.mxu1 %v110_v4  ;;  %v236_v21 = vld [vmem:[%s588_s9 + $0x10] sm:$0xff]  ;;  %v235_v22 = vld [vmem:[%s588_s9 + $0x8] sm:$0xff] }
  0x1b   :  { %v109_v6 = vld [vmem:[%s579_s0] sm:$0x3]  ;;  %288 = vmatmul.msk.f32.vlgmr.msra.gmra.mxu0 %vm114_vm2, %v112_v5  ;;  %225 = vmatpush.msra.mxu3 %v202_v8  ;;  %v303_v24 = vld [vmem:[#allocation8] ss:$0 sm:$0xff]  ;;  %v304_v29 = vld [vmem:[#allocation10] ss:$0 sm:$0xff] }
  0x1c   :  { %289 = vmatmul.msk.f32.vlgmr.msra.gmra.mxu1 %vm138_vm3, %v109_v6  ;;  %v200_v10 = vld [vmem:[%s586_s7] sm:$0xff]  ;;  %257 = vmatpush.msrb.mxu0 %v237_v11 }
  0x1d   :  { %226 = vmatpush.msra.mxu3 %v201_v9  ;;  %v234_v23 = vld [vmem:[%s588_s9] sm:$0xff] }
  0x1e   :  { %258 = vmatpush.msrb.mxu0 %v236_v21 }
  0x1f   :  { %227 = vmatpush.msra.mxu3 %v200_v10 }
  0x20   :  { %259 = vmatpush.msrb.mxu0 %v235_v22 }
  0x22   :  { %260 = vmatpush.msrb.mxu0 %v234_v23 }
  0x98   :  { %v135_v12 = vpop.f32.mrf.mxu0 }
  0x99   :  { %v159_v13 = vpop.f32.mrf.mxu1 }
  0x9a   :  { %v160_v14 = vadd.f32 %v159_v13, %v135_v12 }
  0x9b   :  { %v189_v16 = vpop.f32.mrf.mxu2 }
  0x9c   :  { %v192_v17 = vadd.f32 %v189_v16, %v160_v14 }
  0x9e   :  { %v197_v18 = vadd.f32 %v302_v15, %v192_v17 }
  0xa0   :  { %v198_v19 = vmul.f32 0.01, %v197_v18 }
  0xa2   :  { %v199_v20 = vmax.f32 %v197_v18, %v198_v19 }
  0xa4   :  { %292 = vmatmul.msk.f32.vlgmr.msra.gmra.mxu3 %vm208_vm4, %v199_v20 }
 0x127   :  { %v229_v25 = vpop.f32.mrf.mxu3 }
 0x128   :  { %v230_v26 = vadd.f32 %v303_v24, %v229_v25 }
 0x12a   :  { %v232_v27 = vmul.f32 0.01, %v230_v26 }
 0x12c   :  { %v233_v28 = vmax.f32 %v230_v26, %v232_v27 }
 0x12e   :  { %293 = vmatmul.msk.f32.vlgmr.msrb.gmra.mxu0 %vm208_vm4, %v233_v28 }
 0x1ab   :  { %v262_v30 = vpop.f32.mrf.mxu0 }
 0x1ac   :  { %v263_v31 = vadd.f32 %v304_v29, %v262_v30 }
 0x1ae   :  { %v265_v32 = vmul.f32 0.01, %v263_v31 }
 0x1b0   :  { %v266_v33 = vmax.f32 %v263_v31, %v265_v32 }
 0x1b2   :  { %268 = vst.msk [vmem:[#allocation11] sm:$0x3] %vm267_vm5, %v266_v33 }
 0x1b3   :  { %279 = dma.vmem_to_hbm [thread:$0]  %s275_s19, 32, %s277_s21, [#allocation4]  }
 0x1b4   :  { %455 = dma.done.wait [#allocation4], 32  }
 0x1b5   :  { %456 = vsyncadd [#allocation4], 4294967264 }
 0x1b6   :  { %284 = vsyncpa [#allocation3], 1 }
 0x1b7   :  { %285 = vsyncpa [#allocation6], 1 }
 0x1b8   :  { %286 = vsyncpa [#allocation9], 1 }
 0x1b9   :  { %287 = vsyncpa [#allocation4], 1 }

</bundles_post_ra>
